<compile_context>
chip_gen: v7x
topology: tpu7x:2x2x1
jax: 0.10.0
libtpu: 0.0.40
codegen_flags: <defaults>
</compile_context>

<pallas_src>
import functools

import jax
import jax.numpy as jnp
from jax import lax
from jax.experimental import pallas as pl
from jax.experimental.pallas import tpu as pltpu


def _frelu_kernel(C, x_ref, w_ref, b_ref, o_ref):
    # x_ref: (tp, H, W) VMEM block of the (N*C, H, W)-reshaped input.
    # w_ref: (9, C)     SMEM  BN-folded depthwise weights, taps row-major (dy, dx).
    # b_ref: (C,)       SMEM  BN-folded per-channel bias.
    # o_ref: (tp, H, W) VMEM output block.
    tp, H, W = x_ref.shape
    plane0 = pl.program_id(0) * tp          # first global plane of this block

    # Thin boundary masks for the zero-padded 3x3 window, hoisted out of the
    # plane loop; broadcast inside jnp.where instead of full (H, W) planes.
    row = lax.broadcasted_iota(jnp.int32, (H, 1), 0)
    col = lax.broadcasted_iota(jnp.int32, (1, W), 1)
    has_left = col >= 1            # tap reads x[h, w-1]
    has_right = col <= W - 2       # tap reads x[h, w+1]
    has_up = row >= 1              # tap reads x[h-1, w]
    has_down = row <= H - 2        # tap reads x[h+1, w]

    def plane_body(p, carry):
        c = (plane0 + p) % C                      # channel of this plane
        x = x_ref[p].astype(jnp.float32)          # (H, W)

        # Lane (W-axis) shifted strips, built once and reused by all three
        # kernel rows.  Non-negative shifts only: roll by W-1 == roll by -1.
        left = jnp.where(has_left, pltpu.roll(x, 1, axis=1), 0.0)        # x[h, w-1]
        right = jnp.where(has_right, pltpu.roll(x, W - 1, axis=1), 0.0)  # x[h, w+1]

        # Weighted row-sums first (roll(w*t) == w*roll(t)), so only two
        # sublane rolls + two selects remain.
        rs_up = w_ref[0, c] * left + w_ref[1, c] * x + w_ref[2, c] * right
        rs_mid = w_ref[3, c] * left + w_ref[4, c] * x + w_ref[5, c] * right
        rs_dn = w_ref[6, c] * left + w_ref[7, c] * x + w_ref[8, c] * right

        acc = rs_mid
        acc = acc + jnp.where(has_up, pltpu.roll(rs_up, 1, axis=0), 0.0)       # from row h-1
        acc = acc + jnp.where(has_down, pltpu.roll(rs_dn, H - 1, axis=0), 0.0)  # from row h+1

        y = acc + b_ref[c]                        # folded BN + conv bias
        o_ref[p] = jnp.maximum(x, y).astype(o_ref.dtype)
        return carry

    lax.fori_loop(0, tp, plane_body, 0)


def _pick_planes_per_block(num_planes, plane_bytes, target_bytes=4 * 1024 * 1024):
    """Largest divisor of num_planes whose block fits the byte budget.

    Keeps at least two grid steps when possible so both TensorCores get work
    under dimension_semantics=("parallel",).
    """
    budget = max(1, target_bytes // max(1, plane_bytes))
    if num_planes > 1:
        budget = min(budget, max(1, num_planes // 2))
    best = 1
    for d in range(1, min(num_planes, budget) + 1):
        if num_planes % d == 0:
            best = d
    return best


def frelu_nchw(x, conv_w, conv_bias, gamma, beta, run_mean, run_var, eps=1e-5):
    """FReLU forward, NCHW in / NCHW out (inference-mode BatchNorm).

    x:        (N, C, H, W)
    conv_w:   (C, 1, 3, 3)  depthwise conv weight (PyTorch layout)
    conv_bias, gamma, beta, run_mean, run_var: (C,)
    """
    N, C, H, W = x.shape

    # Fold BN (eval mode) + conv bias:
    #   bn(conv(x) + b) = conv(x) * s + (beta + s * (b - mean)),
    #   s = gamma / sqrt(var + eps);  s is folded into the depthwise weights.
    scale = (gamma / jnp.sqrt(run_var + eps)).astype(jnp.float32)
    bias = (beta + scale * (conv_bias - run_mean)).astype(jnp.float32)
    w_folded = (conv_w.reshape(C, 9).astype(jnp.float32) * scale[:, None]).T  # (9, C)

    P = N * C
    x3 = x.reshape(P, H, W)                       # leading-dim merge: free
    tp = _pick_planes_per_block(P, H * W * x.dtype.itemsize)

    kernel = functools.partial(_frelu_kernel, C)
    out3 = pl.pallas_call(
        kernel,
        out_shape=jax.ShapeDtypeStruct((P, H, W), x.dtype),
        grid_spec=pltpu.PrefetchScalarGridSpec(
            num_scalar_prefetch=0,
            grid=(P // tp,),
            in_specs=[
                pl.BlockSpec((tp, H, W), lambda i: (i, 0, 0)),
                pl.BlockSpec(memory_space=pltpu.MemorySpace.SMEM),   # weights
                pl.BlockSpec(memory_space=pltpu.MemorySpace.SMEM),   # bias
            ],
            out_specs=pl.BlockSpec((tp, H, W), lambda i: (i, 0, 0)),
        ),
        compiler_params=pltpu.CompilerParams(
            dimension_semantics=("parallel",),
            vmem_limit_bytes=48 * 1024 * 1024),
    )(x3, w_folded, bias)
    return out3.reshape(N, C, H, W)


def _reference_nchw(x, conv_w, conv_bias, gamma, beta, run_mean, run_var,
                    eps=1e-5):
    """Pure-JAX reference: explicit zero-padded 3x3 cross-correlation + BN."""
    N, C, H, W = x.shape
    xf = x.astype(jnp.float32)
    xp = jnp.pad(xf, ((0, 0), (0, 0), (1, 1), (1, 1)))
    conv = jnp.zeros_like(xf)
    for i in range(3):
        for j in range(3):
            tap = conv_w[:, 0, i, j].astype(jnp.float32)[None, :, None, None]
            conv = conv + tap * xp[:, :, i:i + H, j:j + W]
    conv = conv + conv_bias.astype(jnp.float32)[None, :, None, None]
    bn = (conv - run_mean[None, :, None, None]) / jnp.sqrt(
        run_var[None, :, None, None] + eps)
    bn = bn * gamma[None, :, None, None] + beta[None, :, None, None]
    return jnp.maximum(xf, bn).astype(x.dtype)


if __name__ == "__main__":
    key = jax.random.PRNGKey(0)
    N, C, H, W = 2, 4, 16, 16
    k_x, k_w, k_b, k_g, k_beta, k_m, k_v = jax.random.split(key, 7)

    x = jax.random.normal(k_x, (N, C, H, W), dtype=jnp.float32)

    # Parameter shapes match nn.Conv2d(c1, c1, 3, 1, 1, groups=c1) + BatchNorm2d(c1).
    conv_w = 0.1 * jax.random.normal(k_w, (C, 1, 3, 3), dtype=jnp.float32)
    conv_bias = 0.1 * jax.random.normal(k_b, (C,), dtype=jnp.float32)
    gamma = 1.0 + 0.1 * jax.random.normal(k_g, (C,), dtype=jnp.float32)
    beta = 0.1 * jax.random.normal(k_beta, (C,), dtype=jnp.float32)
    run_mean = 0.1 * jax.random.normal(k_m, (C,), dtype=jnp.float32)
    run_var = jnp.abs(1.0 + 0.1 * jax.random.normal(k_v, (C,), dtype=jnp.float32))

    out = frelu_nchw(x, conv_w, conv_bias, gamma, beta, run_mean, run_var)
    out = jax.block_until_ready(out)

    ref = _reference_nchw(x, conv_w, conv_bias, gamma, beta, run_mean, run_var)
    assert out.shape == (N, C, H, W)
    assert jnp.allclose(out, ref, atol=1e-4, rtol=1e-4), "mismatch vs reference"

    print("KERNEL_OK")
</pallas_src>

<mosaic_0001>
module attributes {stable_mosaic.version = 11 : i64} {
  func.func @_frelu_kernel(%arg0: i32, %arg1: memref<4x16x16xf32, #tpu.memory_space<vmem>>, %arg2: memref<9x4xf32, #tpu.memory_space<smem>>, %arg3: memref<4xf32, #tpu.memory_space<smem>>, %arg4: memref<4x16x16xf32, #tpu.memory_space<vmem>>) attributes {dimension_semantics = [#tpu.dimension_semantics<parallel>], iteration_bounds = array<i64: 2>, scalar_prefetch = 0 : i64, scratch_operands = 0 : i64, tpu.core_type = #tpu.core_type<tc>, window_params = [{transform_indices = @transform_0, window_bounds = array<i64: 4, 16, 16>}, {transform_indices = @transform_1, window_bounds = array<i64: 9, 4>}, {transform_indices = @transform_2, window_bounds = array<i64: 4>}, {transform_indices = @transform_3, window_bounds = array<i64: 4, 16, 16>}]} {
    %c4_i32 = arith.constant 4 : i32
    %0 = arith.muli %arg0, %c4_i32 : i32
    %1 = tpu.iota {dimensions = array<i32: 0>} : vector<16x1xi32>
    %2 = tpu.iota {dimensions = array<i32: 1>} : vector<1x16xi32>
    %c1_i32 = arith.constant 1 : i32
    %3 = vector.broadcast %c1_i32 : i32 to vector<1x16xi32>
    %4 = arith.cmpi sge, %2, %3 : vector<1x16xi32>
    %c14_i32 = arith.constant 14 : i32
    %5 = vector.broadcast %c14_i32 : i32 to vector<1x16xi32>
    %6 = arith.cmpi sle, %2, %5 : vector<1x16xi32>
    %c1_i32_0 = arith.constant 1 : i32
    %7 = vector.broadcast %c1_i32_0 : i32 to vector<16x1xi32>
    %8 = arith.cmpi sge, %1, %7 : vector<16x1xi32>
    %c14_i32_1 = arith.constant 14 : i32
    %9 = vector.broadcast %c14_i32_1 : i32 to vector<16x1xi32>
    %10 = arith.cmpi sle, %1, %9 : vector<16x1xi32>
    %c0_i32 = arith.constant 0 : i32
    %c4_i32_2 = arith.constant 4 : i32
    %11 = arith.addi %c0_i32, %c4_i32_2 : i32
    %c1_i32_3 = arith.constant 1 : i32
    scf.for %arg5 = %c0_i32 to %11 step %c1_i32_3  : i32 {
      %12 = arith.addi %0, %arg5 : i32
      %c4_i32_5 = arith.constant 4 : i32
      %c0_i32_6 = arith.constant 0 : i32
      %13 = arith.cmpi eq, %c4_i32_5, %c0_i32_6 : i32
      %c1_i32_7 = arith.constant 1 : i32
      %14 = arith.select %13, %c1_i32_7, %c4_i32_5 : i32
      %15 = arith.remsi %12, %14 : i32
      %c0_i32_8 = arith.constant 0 : i32
      %16 = arith.cmpi ne, %15, %c0_i32_8 : i32
      %c0_i32_9 = arith.constant 0 : i32
      %17 = arith.cmpi slt, %15, %c0_i32_9 : i32
      %c0_i32_10 = arith.constant 0 : i32
      %18 = arith.cmpi slt, %14, %c0_i32_10 : i32
      %19 = arith.xori %17, %18 : i1
      %20 = arith.andi %19, %16 : i1
      %21 = arith.addi %15, %14 : i32
      %22 = arith.select %20, %21, %15 : i32
      %23 = arith.index_cast %arg5 : i32 to index
      %c0 = arith.constant 0 : index
      %c0_11 = arith.constant 0 : index
      %24 = vector.load %arg1[%23, %c0, %c0_11] : memref<4x16x16xf32, #tpu.memory_space<vmem>>, vector<1x16x16xf32>
      %25 = vector.shape_cast %24 : vector<1x16x16xf32> to vector<16x16xf32>
      %c1_i32_12 = arith.constant 1 : i32
      %26 = tpu.dynamic_rotate %25 by %c1_i32_12 dim 1 : vector<16x16xf32>, i32 -> vector<16x16xf32>
      %cst = arith.constant 0.000000e+00 : f32
      %27 = vector.shape_cast %4 : vector<1x16xi1> to vector<1x16xi1>
      %28 = vector.broadcast %27 : vector<1x16xi1> to vector<16x16xi1>
      %29 = vector.broadcast %cst : f32 to vector<16x16xf32>
      %30 = arith.select %28, %26, %29 : vector<16x16xi1>, vector<16x16xf32>
      %c15_i32 = arith.constant 15 : i32
      %31 = tpu.dynamic_rotate %25 by %c15_i32 dim 1 : vector<16x16xf32>, i32 -> vector<16x16xf32>
      %cst_13 = arith.constant 0.000000e+00 : f32
      %32 = vector.shape_cast %6 : vector<1x16xi1> to vector<1x16xi1>
      %33 = vector.broadcast %32 : vector<1x16xi1> to vector<16x16xi1>
      %34 = vector.broadcast %cst_13 : f32 to vector<16x16xf32>
      %35 = arith.select %33, %31, %34 : vector<16x16xi1>, vector<16x16xf32>
      %c0_14 = arith.constant 0 : index
      %36 = arith.index_cast %22 : i32 to index
      %37 = memref.load %arg2[%c0_14, %36] : memref<9x4xf32, #tpu.memory_space<smem>>
      %38 = vector.broadcast %37 : f32 to vector<16x16xf32>
      %39 = arith.mulf %38, %30 : vector<16x16xf32>
      %c1 = arith.constant 1 : index
      %40 = arith.index_cast %22 : i32 to index
      %41 = memref.load %arg2[%c1, %40] : memref<9x4xf32, #tpu.memory_space<smem>>
      %42 = vector.broadcast %41 : f32 to vector<16x16xf32>
      %43 = arith.mulf %42, %25 : vector<16x16xf32>
      %44 = arith.addf %39, %43 : vector<16x16xf32>
      %c2 = arith.constant 2 : index
      %45 = arith.index_cast %22 : i32 to index
      %46 = memref.load %arg2[%c2, %45] : memref<9x4xf32, #tpu.memory_space<smem>>
      %47 = vector.broadcast %46 : f32 to vector<16x16xf32>
      %48 = arith.mulf %47, %35 : vector<16x16xf32>
      %49 = arith.addf %44, %48 : vector<16x16xf32>
      %c3 = arith.constant 3 : index
      %50 = arith.index_cast %22 : i32 to index
      %51 = memref.load %arg2[%c3, %50] : memref<9x4xf32, #tpu.memory_space<smem>>
      %52 = vector.broadcast %51 : f32 to vector<16x16xf32>
      %53 = arith.mulf %52, %30 : vector<16x16xf32>
      %c4 = arith.constant 4 : index
      %54 = arith.index_cast %22 : i32 to index
      %55 = memref.load %arg2[%c4, %54] : memref<9x4xf32, #tpu.memory_space<smem>>
      %56 = vector.broadcast %55 : f32 to vector<16x16xf32>
      %57 = arith.mulf %56, %25 : vector<16x16xf32>
      %58 = arith.addf %53, %57 : vector<16x16xf32>
      %c5 = arith.constant 5 : index
      %59 = arith.index_cast %22 : i32 to index
      %60 = memref.load %arg2[%c5, %59] : memref<9x4xf32, #tpu.memory_space<smem>>
      %61 = vector.broadcast %60 : f32 to vector<16x16xf32>
      %62 = arith.mulf %61, %35 : vector<16x16xf32>
      %63 = arith.addf %58, %62 : vector<16x16xf32>
      %c6 = arith.constant 6 : index
      %64 = arith.index_cast %22 : i32 to index
      %65 = memref.load %arg2[%c6, %64] : memref<9x4xf32, #tpu.memory_space<smem>>
      %66 = vector.broadcast %65 : f32 to vector<16x16xf32>
      %67 = arith.mulf %66, %30 : vector<16x16xf32>
      %c7 = arith.constant 7 : index
      %68 = arith.index_cast %22 : i32 to index
      %69 = memref.load %arg2[%c7, %68] : memref<9x4xf32, #tpu.memory_space<smem>>
      %70 = vector.broadcast %69 : f32 to vector<16x16xf32>
      %71 = arith.mulf %70, %25 : vector<16x16xf32>
      %72 = arith.addf %67, %71 : vector<16x16xf32>
      %c8 = arith.constant 8 : index
      %73 = arith.index_cast %22 : i32 to index
      %74 = memref.load %arg2[%c8, %73] : memref<9x4xf32, #tpu.memory_space<smem>>
      %75 = vector.broadcast %74 : f32 to vector<16x16xf32>
      %76 = arith.mulf %75, %35 : vector<16x16xf32>
      %77 = arith.addf %72, %76 : vector<16x16xf32>
      %c1_i32_15 = arith.constant 1 : i32
      %78 = tpu.dynamic_rotate %49 by %c1_i32_15 dim 0 : vector<16x16xf32>, i32 -> vector<16x16xf32>
      %cst_16 = arith.constant 0.000000e+00 : f32
      %79 = vector.shape_cast %8 : vector<16x1xi1> to vector<16x1xi1>
      %80 = vector.broadcast %79 : vector<16x1xi1> to vector<16x16xi1>
      %81 = vector.broadcast %cst_16 : f32 to vector<16x16xf32>
      %82 = arith.select %80, %78, %81 : vector<16x16xi1>, vector<16x16xf32>
      %83 = arith.addf %63, %82 : vector<16x16xf32>
      %c15_i32_17 = arith.constant 15 : i32
      %84 = tpu.dynamic_rotate %77 by %c15_i32_17 dim 0 : vector<16x16xf32>, i32 -> vector<16x16xf32>
      %cst_18 = arith.constant 0.000000e+00 : f32
      %85 = vector.shape_cast %10 : vector<16x1xi1> to vector<16x1xi1>
      %86 = vector.broadcast %85 : vector<16x1xi1> to vector<16x16xi1>
      %87 = vector.broadcast %cst_18 : f32 to vector<16x16xf32>
      %88 = arith.select %86, %84, %87 : vector<16x16xi1>, vector<16x16xf32>
      %89 = arith.addf %83, %88 : vector<16x16xf32>
      %90 = arith.index_cast %22 : i32 to index
      %91 = memref.load %arg3[%90] : memref<4xf32, #tpu.memory_space<smem>>
      %92 = vector.broadcast %91 : f32 to vector<16x16xf32>
      %93 = arith.addf %89, %92 : vector<16x16xf32>
      %94 = arith.maximumf %25, %93 : vector<16x16xf32>
      %95 = arith.index_cast %arg5 : i32 to index
      %c0_19 = arith.constant 0 : index
      %c0_20 = arith.constant 0 : index
      %96 = vector.load %arg4[%95, %c0_19, %c0_20] : memref<4x16x16xf32, #tpu.memory_space<vmem>>, vector<1x16x16xf32>
      %97 = vector.shape_cast %96 : vector<1x16x16xf32> to vector<16x16xf32>
      %98 = vector.shape_cast %94 : vector<16x16xf32> to vector<1x16x16xf32>
      tpu.vector_store %arg4[%95, %c0_19, %c0_20], %98 {strides = array<i32>} : memref<4x16x16xf32, #tpu.memory_space<vmem>>, vector<1x16x16xf32>,
    }
    %c4_i32_4 = arith.constant 4 : i32
    return
  }
  func.func @transform_0(%arg0: i32) -> (i32, i32, i32) {
    %c0_i32 = arith.constant 0 : i32
    %c0_i32_0 = arith.constant 0 : i32
    %c0_i32_1 = arith.constant 0 : i32
    return %arg0, %c0_i32, %c0_i32_0 : i32, i32, i32
  }
  func.func @transform_1(%arg0: i32) -> (i32, i32) {
    %c0_i32 = arith.constant 0 : i32
    %c0_i32_0 = arith.constant 0 : i32
    %c0_i32_1 = arith.constant 0 : i32
    return %c0_i32, %c0_i32_0 : i32, i32
  }
  func.func @transform_2(%arg0: i32) -> i32 {
    %c0_i32 = arith.constant 0 : i32
    %c0_i32_0 = arith.constant 0 : i32
    return %c0_i32 : i32
  }
  func.func @transform_3(%arg0: i32) -> (i32, i32, i32) {
    %c0_i32 = arith.constant 0 : i32
    %c0_i32_0 = arith.constant 0 : i32
    %c0_i32_1 = arith.constant 0 : i32
    return %arg0, %c0_i32, %c0_i32_0 : i32, i32, i32
  }
}

</mosaic_0001>

<bundles_post_ra>
// kernel: tpu_custom_call.1
= control target key start
LH: loop header
LB: loop body
LE: loop exit
PB: predicated region body
PF: predicated region fallthrough
CT: control target
= control target key end

     0   :  { %s1132_s0 = inlined_call_operand.hbm [shape: f32[8,16,16], index: 0, kind: input, shape index: {}]   ;;  %s1133_s1 = inlined_call_operand.vmem [shape: f32[9,4], index: 1, kind: input, shape index: {}]   ;;  %s1134_s2 = inlined_call_operand.vmem [shape: f32[4], index: 2, kind: input, shape index: {}]   ;;  %s1135_s3 = inlined_call_operand.hbm [shape: f32[8,16,16], index: 3, kind: output, shape index: {}]  }
   0x1   :  { %1145 = sst [smem:[#allocation20_spill]] %s1132_s0 }
   0x2   :  { %1146 = sst [smem:[#allocation21_spill]] %s1133_s1 }
   0x3   :  { %1147 = sst [smem:[#allocation22_spill]] %s1134_s2 }
   0x4   :  { %8 = vsyncpa [#allocation3], 0 }
   0x5   :  { %10 = vsyncpa [#allocation3 + $0x1], 0 }
   0x6   :  { %11 = vsyncpa [#allocation5], 0 }
   0x7   :  { %12 = vsyncpa [#allocation8], 0 }
   0x8   :  { %13 = vsyncpa [#allocation4], 0 }
   0x9   :  { %15 = vsyncpa [#allocation4 + $0x1], 0  ;;  %s832_s12 = smov 0   ;;  %s834_s13 = smov 0  }
   0xa   :  { %s836_s14 = smov 0   ;;  %s838_s15 = smov 0  }
   0xb LB: > { %1148 = sst [smem:[#allocation14_spill]] %s787_s13  ;;  %s853_s16 = sadd.s32 4294967295, %s795_s15   ;;  %s795_s15 = sphi %s838_s15, %s1176_s15   ;;  %s791_s14 = sphi %s836_s14, %s1179_s14   ;;  %s787_s13 = sphi %s834_s13, %s1178_s13   ;;  %s783_s12 = sphi %s832_s12, %s1177_s12  }
   0xc   : > { %1149 = sst [smem:[#allocation15_spill]] %s791_s14  ;;  %s522_s17 = sadd.s32 4294967294, %s795_s15  }
   0xd   : > { %1150 = sst [smem:[#allocation16_spill]] %s795_s15  ;;  %p41_p0 = scmp.ne.s32.totalorder %s787_s13, %s783_s12 }
   0xe   : > { %p1136_p1 = scmp.eq.s32.totalorder %s853_s16, 0  ;;  %p113_p3 = scmp.eq.s32.totalorder %s522_s17, 1 }
   0xf   : > { %p523_p5 = scmp.ge.s32.totalorder %s795_s15, 1  ;;  %p120_p7 = scmp.lt.s32.totalorder %s795_s15, 3 }
  0x10   : > { %p862_p4 = por %p1136_p1, %p41_p0  ;;  %p867_p6 = por %p113_p3, %p41_p0 }
  0x11   : > { %s1153_s1 = sld [smem:[#allocation21_spill]]  ;;  %p875_p8 = pnand %p523_p5, %p120_p7 }
  0x12   : > { %s1151_s18 = scalar_select %p862_p4, 1, 0 }
  0x13   : > { %s1152_s19 = scalar_select %p867_p6, 1, 0 }
  0x14   : > { %p587_p9 = pneg %p875_p8  ;;  %s1155_s2 = sld [smem:[#allocation22_spill]] }
  0x16   : > { %p887_p11 = pnand %p587_p9, %p1136_p1 }
  0x17   : > { %s132_s22 = sshll.u32 %s1153_s1, 4  ;;  %s133_s22 = int_to_ptr.vmem [resolvable:$true] %s132_s22 }
  0x18   : > { %s657_s28 = scalar_lea.vmem %s133_s22, 256  ;;  %p659_p13 = pneg %p887_p11 }
  0x19   : > { %p658_p12 = scmp.ne.s32.totalorder %s133_s22, %s657_s28  ;;  %p665_p5 = scmp.lt.s32.totalorder %s133_s22, %s133_s22 }
  0x1a   : > { %s146_s26 = sshll.u32 %s1155_s2, 4  ;;  %p666_p7 = scmp.lt.s32.totalorder %s657_s28, %s657_s28  ;;  %s147_s26 = int_to_ptr.vmem [resolvable:$true] %s146_s26 }
  0x1b   : > { %p660_p0 = pnand %p659_p13, %p658_p12 }
  0x1c   : > { %p667_p10 = por %p666_p7, %p665_p5 }
  0x1d   : > { %p661_p3 = pneg %p660_p0 }
  0x1f   : > { %p668_p2 = pnand %p667_p10, %p661_p3 }
  0x21   : > { %671 = shalt.err (!%p668_p2)
}
  0x22   : > { %s801_s29 = smov [#allocation6]   ;;  %s802_s30 = smov 128  }
  0x23   : > { %s803_s4 = smov 8   ;;  %s672_s5 = scalar_lea.vmem %s147_s26, 16 }
  0x24   : > { %590 = dma.vmem_to_smem (!%p887_p11), %s133_s22, 256, %s801_s29, [#allocation5], %s802_s30, %s802_s30, %s803_s4  }
  0x25   : > { %p673_p9 = scmp.ne.s32.totalorder %s147_s26, %s672_s5  ;;  %p680_p1 = scmp.lt.s32.totalorder %s147_s26, %s147_s26 }
  0x26   : > { %p681_p5 = scmp.lt.s32.totalorder %s672_s5, %s672_s5 }
  0x27   : > { %p675_p12 = pnand %p673_p9, %p659_p13 }
  0x28   : > { %p682_p10 = por %p681_p5, %p680_p1 }
  0x29   : > { %p676_p0 = pneg %p675_p12 }
  0x2b   : > { %p683_p2 = pnand %p682_p10, %p676_p0 }
  0x2d   : > { %686 = shalt.err (!%p683_p2)
}
  0x2e   : > { %s804_s6 = smov [#allocation7]   ;;  %s907_s7 = sadd.s32 1, %s795_s15  }
  0x2f   : > { %593 = dma.vmem_to_smem (!%p887_p11), %s147_s26, 16, %s804_s6, [#allocation8]  }
  0x30   : > { %1157 = sst [smem:[#allocation17_spill]] %s907_s7  ;;  %s28_s8 = sadd.s32 1, %s791_s14 }
  0x31   : > { %s25_s9 = ssub.s32 %s795_s15, %s907_s7  ;;  %p35_p1 = scmp.ne.s32.totalorder %s791_s14, %s787_s13 }
  0x32   : > { %p26_p13 = scmp.eq.s32.totalorder %s25_s9, 0  ;;  %p36_p3 = scmp.eq.s32.totalorder %s795_s15, 0 }
  0x33   : > { %p1158_p7 = scmp.eq.s32.totalorder %s853_s16, 1  ;;  %p604_p12 = scmp.lt.s32.totalorder %s795_s15, 2 }
  0x34   : > { %s923_s11 = scalar_select %p26_p13, %s791_s14, %s28_s8  }
  0x35   : > { %p917_p9 = por %p1158_p7, %p35_p1  ;;  %p37_p0 = por %p36_p3, %p35_p1 }
  0x36   : > { %1160 = sst [smem:[#allocation18_spill]] %s923_s11  ;;  %s157_s17 = sand.u32 1, %s791_s14  }
  0x37   : > { %s1159_s10 = scalar_select %p917_p9, 1, 0 }
  0x38   : > { %s527_s20 = sshll.u32 %s157_s17, 6  ;;  %s556_s21 = sshll.u32 %s795_s15, 10 }
  0x39   : > { %s1161_s0 = sld [smem:[#allocation20_spill]]  ;;  %s161_s26 = scalar_lea.vmem [#allocation2], %s527_s20 }
  0x3a   : > { %s169_s27 = sshll.u32 %s161_s26, 4  ;;  %p934_p11 = pnand %p604_p12, %p37_p0  ;;  %s932_s27 = int_to_ptr.vmem [resolvable:$true] %s169_s27 }
  0x3b   : > { %s938_s29 = scalar_lea.sflag [#allocation3], %s157_s17 }
  0x3c   : > { %p689_p10 = pneg %p934_p11 }
  0x3f   : > { %s930_s25 = scalar_lea.hbm %s1161_s0, %s556_s21  ;;  %s692_s9 = scalar_lea.hbm %s1161_s0, 2048 }
  0x40   : > { %s687_s5 = scalar_lea.hbm %s930_s25, 1024  ;;  %p693_p13 = scmp.lt.u32.totalorder %s930_s25, %s1161_s0 }
  0x41   : > { %p688_p5 = scmp.ne.s32.totalorder %s930_s25, %s687_s5  ;;  %p694_p3 = scmp.lt.u32.totalorder %s692_s9, %s687_s5 }
  0x42   : > { %p696_p12 = scmp.lt.u32.totalorder %s687_s5, %s930_s25 }
  0x43   : > { %p690_p2 = pnand %p689_p10, %p688_p5  ;;  %p695_p7 = por %p694_p3, %p693_p13 }
  0x45   : > { %p691_p1 = pneg %p690_p2  ;;  %p697_p0 = por %p696_p12, %p695_p7 }
  0x47   : > { %p698_p6 = pnand %p697_p0, %p691_p1 }
  0x49   : > { %701 = shalt.err (!%p698_p6)
}
  0x4a   : > { %s702_s17 = scalar_lea.vmem %s932_s27, 1024  ;;  %s805_s22 = smov [#allocation2]  }
  0x4b   : > { %p703_p5 = scmp.ne.s32.totalorder %s932_s27, %s702_s17  ;;  %s707_s24 = sshll.u32 %s805_s22, 4  ;;  %s708_s24 = int_to_ptr.vmem [resolvable:$false] %s707_s24 }
  0x4c   : > { %s709_s26 = scalar_lea.vmem %s708_s24, 2048  ;;  %p710_p4 = scmp.lt.s32.totalorder %s932_s27, %s708_s24 }
  0x4d   : > { %p705_p2 = pnand %p703_p5, %p689_p10  ;;  %p711_p13 = scmp.lt.s32.totalorder %s709_s26, %s702_s17 }
  0x4f   : > { %p706_p9 = pneg %p705_p2  ;;  %p712_p3 = por %p711_p13, %p710_p4 }
  0x51   : > { %p713_p7 = pnand %p712_p3, %p706_p9 }
  0x53   : > { %716 = shalt.err (!%p713_p7)
}
  0x54   : > { %597 = dma.hbm_to_vmem [thread:$0]  (!%p934_p11), %s930_s25, 1024, %s932_s27, %s938_s29, %s802_s30, %s802_s30, %s803_s4  }
  0x55   : > { %181 = sbr.rel (%p875_p8) target bundleno = 508 (0x1fc), region = 32 }
  0x5c   : > { %s972_s5 = sand.u32 1, %s787_s13   ;;  %p1164_p4 = scmp.ne.s32.totalorder %s1151_s18, 0 }
  0x5d   : > { %s532_s6 = sshll.u32 %s972_s5, 6  ;;  %s184_s8 = scalar_lea.sflag [#allocation3], %s972_s5 }
  0x5e   : > { %s976_s9 = scalar_lea.vmem [#allocation2], %s532_s6 }
  0x5f   : > { %1163 = sst [smem:[#allocation19_spill]] %s976_s9 }
  0x60   : > { %766 = dma.done.wait (%p1164_p4), %s184_s8, 1024  }
  0x61   : > { %768 = vsyncadd (%p1164_p4), %s184_s8, 4294966272  ;;  %p1165_p6 = scmp.eq.s32.totalorder %s853_s16, 0 }
  0x63   : > { %770 = dma.done.wait (%p1165_p6), [#allocation5], 256   ;;  %p1166_p8 = pmov %p1165_p6 }
  0x64   : > { %p1167_p9 = pmov %p1165_p6 }
  0x65   : > { %772 = vsyncadd (%p1166_p8), [#allocation5], 4294967040 }
  0x66   : > { %774 = dma.done.wait (%p1167_p9), [#allocation8], 16   ;;  %p1168_p11 = pmov %p1165_p6 }
  0x68   : > { %776 = vsyncadd (%p1168_p11), [#allocation8], 4294967280 }
  0x69   : > { %200 = sfence }
  0x6a   : > { %v222_v0 = vlaneseq  ;;  %s1002_s18 = scalar_lea.vmem [#allocation9], %s532_s6  ;;  %s1004_s30 = smov 0  }
  0x6c   : > { %v991_v1 = vshrl.u32 %v222_v0, 7  ;;  %v993_v2 = vand.u32 127, %v222_v0 }
  0x6e   : > { %v996_v3 = vadd.s32 8, %v991_v1  ;;  %vm227_vm0 = vcmp.ge.s32.totalorder %v993_v2, 1  ;;  %vm228_vm1 = vcmp.le.s32.totalorder %v993_v2, 14  ;;  %vm229_vm2 = vcmp.ge.s32.totalorder %v991_v1, 1 }
  0x70   : > { %vm232_vm3 = vcmp.le.s32.totalorder %v996_v3, 14 }
  0x71 LB: >> { %s1169_s9 = sld [smem:[#allocation19_spill]]  ;;  %s1139_s4 = sshll.u32 %s799_s30, 4  ;;  %vm256_vm4 = vcmask 1047680   ;;  %vm369_vm5 = vcmp.lt.s32.totalorder %v991_v1, 1  ;;  %vm382_vm6 = vcmp.lt.s32.totalorder %v991_v1, 7  ;;  %vm400_vm7 = vcmask 130048   ;;  %s799_s30 = sphi %s1004_s30, %s238_s30  }
  0x72   : >> { %s806_s27 = smov 16   ;;  %s807_s28 = smov 113  }
  0x73   : >> { %s808_s29 = smov 127   ;;  %s1170_s23 = sshll.u32 %s853_s16, 2 }
  0x74   : >> { %s239_s20 = sadd.s32 %s799_s30, %s1170_s23 }
  0x75   : >> { %s241_s21 = ssub.s32 0, %s239_s20  ;;  %p240_p10 = scmp.lt.s32.totalorder %s239_s20, 0 }
  0x76   : >> { %s537_s17 = smin.u32 %s241_s21, %s239_s20 }
  0x77   : >> { %s253_s25 = scalar_lea.vmem %s1169_s9, %s1139_s4  ;;  %s243_s22 = sand.u32 3, %s537_s17  }
  0x78   : >> { %v1013_v4 = vld [vmem:[%s253_s25] sm:$0xff]  ;;  %v1016_v5 = vld [vmem:[%s253_s25 + $0x8] sm:$0xff]  ;;  %s244_s24 = ssub.s32 0, %s243_s22 }
  0x79   : >> { %257 = vrot.lane.b32.xlu0 %v1013_v4, %s806_s27  ;;  %s1181_s24 = smov (!%p240_p10, %s244_s24), %s243_s22 }
  0x7a   : >> { %p539_p1 = scmp.lt.s32.totalorder %s1181_s24, 0  ;;  %s250_s26 = sadd.s32 4, %s1181_s24 }
  0x7c   : >> { %s1183_s26 = smov (!%p539_p1, %s250_s26), %s1181_s24 }
  0x7d   : >> { %260 = vrot.lane.b32.xlu0 %v1016_v5, %s806_s27  ;;  %s295_s6 = sshra.s32 %s1183_s26, 7  ;;  %s1031_s4 = sld [smem:[#allocation6 + %s1183_s26]] }
  0x7e   : >> { %s557_s8 = sshll.u32 %s295_s6, 7 }
  0x7f   : >> { %s558_s25 = sadd.s32 128, %s557_s8  ;;  %s568_s23 = sadd.s32 768, %s557_s8 }
  0x80   : >> { %s570_s21 = sadd.s32 896, %s557_s8  ;;  %s564_s17 = sadd.s32 512, %s557_s8 }
  0x81   : >> { %s560_s0 = sadd.s32 256, %s557_s8  ;;  %s572_s1 = sadd.s32 1024, %s557_s8 }
  0x83   : >> { %v292_v17 = vstv %s1031_s4 }
  0xeb   : >> { %v258_v6 = vpop.permute.xlu0 %257 }
  0xec   : >> { %v259_v7 = vsel %vm256_vm4, %v258_v6, %v1013_v4 }
  0xed   : >> { %263 = vrot.lane.b32.xlu1 %v259_v7, %s806_s27 }
  0xef   : >> { %v261_v8 = vpop.permute.xlu0 %260 }
  0xf0   : >> { %v262_v9 = vsel %vm256_vm4, %v261_v8, %v1016_v5 }
  0xf1   : >> { %265 = vrot.lane.b32.xlu1 %v262_v9, %s806_s27  ;;  %s300_s27 = sand.u32 127, %s1183_s26 }
  0xf2   : >> { %s344_s22 = sadd.s32 %s568_s23, %s300_s27  ;;  %s351_s24 = sadd.s32 %s570_s21, %s300_s27 }
  0xf3   : >> { %s326_s9 = sadd.s32 %s564_s17, %s300_s27  ;;  %s1035_s6 = sld [smem:[#allocation6 + %s344_s22]] }
  0xf4   : >> { %s352_s11 = sld [smem:[#allocation6 + %s351_s24]]  ;;  %s360_s14 = sadd.s32 %s572_s1, %s300_s27 }
  0xf5   : >> { %s327_s7 = sld [smem:[#allocation6 + %s326_s9]]  ;;  %s1171_s1 = sshll.u32 %s799_s30, 4 }
  0xf6   : >> { %s1041_s23 = sld [smem:[#allocation6 + %s360_s14]]  ;;  %s238_s30 = sadd.s32 1, %s799_s30  }
  0xf7   : >> { %p235_p12 = scmp.ge.s32.totalorder %s238_s30, 4  }
  0xf8   : > { %s404_s9 = scalar_lea.sflag (%p235_p12), [#allocation4], %s972_s5  ;;  %p1172_p5 = scmp.ne.s32.totalorder (%p235_p12), %s1159_s10, 0 }
  0xf9   : >> { %v346_v18 = vstv %s1035_s6  ;;  %s809_s30 = smov (%p235_p12), [#allocation9]  }
  0xfa   : >> { %v353_v19 = vstv %s352_s11  ;;  %s418_s11 = sshll.u32 (%p235_p12), %s1002_s18, 4  ;;  %s1088_s11 = int_to_ptr.vmem [resolvable:$true] %s418_s11 }
  0xfb   : >> { %v328_v22 = vstv %s327_s7  ;;  %v354_v26 = vmul.f32 %v353_v19, %v1013_v4  ;;  %v355_v32 = vmul.f32 %v353_v19, %v1016_v5  ;;  %s717_s4 = scalar_lea.vmem (%p235_p12), %s1088_s11, 1024 }
  0xfc   : >> { %v362_v29 = vstv %s1041_s23  ;;  %v329_v37 = vmul.f32 %v328_v22, %v1013_v4  ;;  %v330_v38 = vmul.f32 %v328_v22, %v1016_v5  ;;  %p718_p0 = scmp.ne.s32.totalorder (%p235_p12), %s1088_s11, %s717_s4 }
  0xfe   : > { %p719_p2 = pnand (%p235_p12), %p718_p0, %p1172_p5 }
 0x100   : > { %p720_p13 = pneg (%p235_p12), %p719_p2 }
 0x15f   : >> { %v264_v10 = vpop.permute.xlu1 %263 }
 0x160   : >> { %v267_v11 = vsel %vm256_vm4, %v264_v10, %v1013_v4 }
 0x161   : >> { %273 = vrot.lane.b32.xlu0 %v267_v11, %s807_s28 }
 0x163   : >> { %v266_v12 = vpop.permute.xlu1 %265 }
 0x164   : >> { %v268_v13 = vsel %vm256_vm4, %v266_v12, %v1016_v5 }
 0x165   : >> { %283 = vrot.lane.b32.xlu0 %v267_v11, %s808_s29  ;;  %275 = vrot.lane.b32.xlu1 %v268_v13, %s807_s28  ;;  %s301_s28 = sadd.s32 %s558_s25, %s300_s27  ;;  %s310_s25 = sadd.s32 %s560_s0, %s300_s27 }
 0x166   : >> { %s1033_s20 = sld [smem:[#allocation6 + %s301_s28]]  ;;  %s566_s28 = sadd.s32 640, %s557_s8 }
 0x167   : >> { %s1039_s15 = sld [smem:[#allocation6 + %s310_s25]]  ;;  %s335_s21 = sadd.s32 %s566_s28, %s300_s27 }
 0x168   : >> { %s393_s0 = sld [smem:[#allocation7 + %s1183_s26]]  ;;  %s721_s26 = sshll.u32 (%p235_p12), %s809_s30, 4  ;;  %s722_s26 = int_to_ptr.vmem [resolvable:$false] %s721_s26 }
 0x169   : >> { %285 = vrot.lane.b32.xlu1 %v268_v13, %s808_s29  ;;  %s562_s29 = sadd.s32 384, %s557_s8  ;;  %p724_p3 = scmp.lt.s32.totalorder (%p235_p12), %s1088_s11, %s722_s26 }
 0x16a   : >> { %s319_s2 = sadd.s32 %s562_s29, %s300_s27  ;;  %s1044_s29 = sld [smem:[#allocation6 + %s335_s21]] }
 0x16b   : >> { %s1037_s13 = sld [smem:[#allocation6 + %s319_s2]]  ;;  %s399_s2 = scalar_lea.vmem %s1002_s18, %s1171_s1 [#allocation9] }
 0x16c   : >> { %v303_v15 = vstv %s1033_s20 }
 0x16d   : >> { %v304_v20 = vmul.f32 %v303_v15, %v1013_v4  ;;  %v312_v23 = vstv %s1039_s15  ;;  %v305_v31 = vmul.f32 %v303_v15, %v1016_v5 }
 0x16e   : >> { %v394_v13 = vstv %s393_s0 }
 0x170   : >> { %v337_v43 = vstv %s1044_s29 }
 0x171   : >> { %v321_v21 = vstv %s1037_s13  ;;  %s574_s13 = sshll.u32 (%p235_p12), %s853_s16, 10  ;;  %s723_s16 = scalar_lea.vmem (%p235_p12), %s722_s26, 2048 }
 0x172   : > { %s1085_s7 = scalar_lea.hbm (%p235_p12), %s1135_s3, %s574_s13  ;;  %p725_p7 = scmp.lt.s32.totalorder (%p235_p12), %s723_s16, %s717_s4 }
 0x174   : > { %p726_p4 = por (%p235_p12), %p725_p7, %p724_p3 }
 0x176   : > { %p727_p6 = pnand (%p235_p12), %p726_p4, %p720_p13 }
 0x1d3   : >> { %v274_v14 = vpop.permute.xlu0 %273 }
 0x1d4   : >> { %v279_v16 = vsel %vm227_vm0, %v274_v14, 0.0 }
 0x1d5   : >> { %v293_v24 = vmul.f32 %v292_v17, %v279_v16  ;;  %v347_v25 = vmul.f32 %v346_v18, %v279_v16  ;;  %v322_v41 = vmul.f32 %v321_v21, %v279_v16 }
 0x1d7   : >> { %v276_v27 = vpop.permute.xlu1 %275  ;;  %v284_v28 = vpop.permute.xlu0 %283  ;;  %v306_v40 = vadd.f32 %v304_v20, %v293_v24  ;;  %v356_v42 = vadd.f32 %v354_v26, %v347_v25  ;;  %v331_v57 = vadd.f32 %v329_v37, %v322_v41 }
 0x1d8   : >> { %v280_v30 = vsel %vm227_vm0, %v276_v27, 0.0  ;;  %v289_v33 = vsel %vm228_vm1, %v284_v28, 0.0 }
 0x1d9   : >> { %v294_v34 = vmul.f32 %v292_v17, %v280_v30  ;;  %v348_v35 = vmul.f32 %v346_v18, %v280_v30  ;;  %v313_v36 = vmul.f32 %v312_v23, %v289_v33  ;;  %v363_v39 = vmul.f32 %v362_v29, %v289_v33 }
 0x1da   : >> { %v323_v46 = vmul.f32 %v321_v21, %v280_v30  ;;  %v338_v54 = vmul.f32 %v337_v43, %v289_v33 }
 0x1db   : >> { %v286_v44 = vpop.permute.xlu1 %285  ;;  %v307_v45 = vadd.f32 %v305_v31, %v294_v34  ;;  %v357_v47 = vadd.f32 %v355_v32, %v348_v35  ;;  %v315_v49 = vadd.f32 %v313_v36, %v306_v40  ;;  %v365_v50 = vadd.f32 %v363_v39, %v356_v42 }
 0x1dc   : >> { %v290_v48 = vsel %vm228_vm1, %v286_v44, 0.0  ;;  %v332_v58 = vadd.f32 %v330_v38, %v323_v46  ;;  %v340_v0 = vadd.f32 %v338_v54, %v331_v57 }
 0x1dd   : >> { %v314_v51 = vmul.f32 %v312_v23, %v290_v48  ;;  %v364_v52 = vmul.f32 %v362_v29, %v290_v48  ;;  %v339_v53 = vmul.f32 %v337_v43, %v290_v48  ;;  %v367_v59 = vrot.slane %v315_v49, 7 }
 0x1de   : >> { %v380_v60 = vrot.slane %v365_v50, 1 }
 0x1df   : >> { %v316_v55 = vadd.f32 %v314_v51, %v307_v45  ;;  %v366_v56 = vadd.f32 %v364_v52, %v357_v47  ;;  %v341_v63 = vadd.f32 %v339_v53, %v332_v58 }
 0x1e1   : >> { %v368_v61 = vrot.slane %v316_v55, 7  ;;  %v381_v62 = vrot.slane %v366_v56, 1 }
 0x1e3   : >> { %v370_v6 = vsel %vm369_vm5, %v367_v59, %v368_v61  ;;  %v371_v7 = vsel %vm369_vm5, %v368_v61, %v367_v59  ;;  %v384_v8 = vsel %vm382_vm6, %v381_v62, %v380_v60  ;;  %v383_v14 = vsel %vm382_vm6, %v380_v60, %v381_v62 }
 0x1e4   : >> { %v376_v9 = vsel %vm229_vm2, %v371_v7, 0.0  ;;  %v379_v10 = vadd.f32 %v370_v6, %v341_v63  ;;  %v390_v11 = vsel %vm232_vm3, %v384_v8, 0.0 }
 0x1e5   : >> { %v378_v12 = vadd.f32 %v376_v9, %v340_v0 }
 0x1e6   : >> { %v392_v15 = vadd.f32 %v390_v11, %v379_v10 }
 0x1e7   : >> { %v391_v16 = vadd.f32 %v383_v14, %v378_v12  ;;  %237 = sbr.rel (!%p235_p12) target bundleno = 113 (0x71), region = 95 }
 0x1e8   : >> { %v396_v17 = vadd.f32 %v394_v13, %v392_v15 }
 0x1e9   : >> { %v395_v18 = vadd.f32 %v394_v13, %v391_v16 }
 0x1ea   : >> { %v398_v19 = vmax.f32 %v1016_v5, %v396_v17 }
 0x1eb   : >> { %v397_v20 = vmax.f32 %v1013_v4, %v395_v18 }
 0x1ec   : >> { %402 = vst.msk [vmem:[%s399_s2 + $0x8] sm:$0xff] %vm400_vm7, %v398_v19 }
 0x1ed   : >> { %401 = vst.msk [vmem:[%s399_s2] sm:$0xff] %vm400_vm7, %v397_v20 }
 0x1ee   : > { %730 = shalt.err (!%p727_p6)
}
 0x1ef   : > { %s731_s18 = scalar_lea.hbm %s1085_s7, 1024  ;;  %s735_s20 = scalar_lea.hbm %s1135_s3, 2048 }
 0x1f0   : > { %p732_p8 = scmp.ne.s32.totalorder %s1085_s7, %s731_s18  ;;  %p736_p10 = scmp.lt.u32.totalorder %s1085_s7, %s1135_s3 }
 0x1f1   : > { %p737_p1 = scmp.lt.u32.totalorder %s735_s20, %s731_s18  ;;  %p739_p0 = scmp.lt.u32.totalorder %s731_s18, %s1085_s7 }
 0x1f2   : > { %p733_p9 = pnand %p732_p8, %p1172_p5 }
 0x1f3   : > { %p738_p12 = por %p737_p1, %p736_p10 }
 0x1f4   : > { %p734_p11 = pneg %p733_p9 }
 0x1f5   : > { %p740_p2 = por %p739_p0, %p738_p12 }
 0x1f7   : > { %p741_p13 = pnand %p740_p2, %p734_p11 }
 0x1f9   : > { %744 = shalt.err (!%p741_p13)
}
 0x1fa   : > { %s810_s24 = smov 128   ;;  %s811_s6 = smov 8  }
 0x1fb   : > { %585 = dma.vmem_to_hbm [thread:$0]  (%p1172_p5), %s1088_s11, 1024, %s1085_s7, %s404_s9, %s810_s24, %s810_s24, %s811_s6  }
 0x1fc PF: > { %s1173_s25 = sld [smem:[#allocation16_spill]]  ;;  %s433_s28 = sand.u32 1, %s783_s12  }
 0x1fd   : > { %p1174_p3 = scmp.ne.s32.totalorder %s1152_s19, 0  ;;  %s434_s23 = scalar_lea.sflag [#allocation4], %s433_s28 }
 0x202   : > { %p1175_p7 = scmp.ge.s32.totalorder %s1173_s25, 2 }
 0x204   : > { %p599_p4 = pnand %p1175_p7, %p1174_p3 }
 0x206   : > { %778 = dma.done.wait (!%p599_p4), %s434_s23, 1024  }
 0x207   : > { %780 = vsyncadd (!%p599_p4), %s434_s23, 4294966272  ;;  %s1176_s15 = sld [smem:[#allocation17_spill]]  ;;  %s1177_s12 = sld [smem:[#allocation14_spill]] }
 0x208   : > { %s1178_s13 = sld [smem:[#allocation15_spill]]  ;;  %s1179_s14 = sld [smem:[#allocation18_spill]] }
 0x20d   : > { %p18_p6 = scmp.ge.s32.totalorder %s1176_s15, 4  }
 0x20f   :  { %20 = sbr.rel (!%p18_p6) target bundleno = 11 (0xb), region = 106 }
 0x216   :  { %439 = vsyncpa [#allocation3], 1 }
 0x217   :  { %441 = vsyncpa [#allocation3 + $0x1], 1 }
 0x218   :  { %442 = vsyncpa [#allocation4], 1 }
 0x219   :  { %444 = vsyncpa [#allocation4 + $0x1], 1 }
 0x21a   :  { %445 = vsyncpa [#allocation5], 1 }
 0x21b   :  { %447 = vsyncpa [#allocation5 + $0x1], 1 }
 0x21c   :  { %448 = vsyncpa [#allocation8], 1 }

</bundles_post_ra>
